<compile_context>
chip_gen: v6e
topology: v6e:2x2x1
jax: 0.10.0
libtpu: 0.0.40
codegen_flags: <defaults>
</compile_context>

<pallas_src>
import jax
import jax.numpy as jnp
from jax import lax
from jax.experimental import pallas as pl
from jax.experimental.pallas import tpu as pltpu

NUM_HEADS = 4
LN_EPS = 1e-5
USE_TANH_GELU = True   # torch nn.GELU() default is exact erf; tanh is the EUP-cheap approx.


def _layer_norm_cmajor(v, w, b):
    """Single-pass LayerNorm over the channel (sublane) axis of a (C, cols) tile."""
    mu = jnp.mean(v, axis=0, keepdims=True)
    mean_sq = jnp.mean(v * v, axis=0, keepdims=True)
    var = jnp.maximum(mean_sq - mu * mu, 0.0)
    return (v - mu) * lax.rsqrt(var + LN_EPS) * w + b


# ----------------------------- Pass A: LN1 + QKV projection -----------------------------
def qkv_projection_kernel(x_ref, ln1w_ref, ln1b_ref, ipw_ref, ipb_ref,
                          q_ref, k_ref, v_ref):
    # x_ref: (1, C, TQ) f32. ipw: (3C, C) bf16 (Q rows pre-scaled by 1/sqrt(D)). ipb: (3C, 1) f32.
    x = x_ref[0]
    C = x.shape[0]
    x_ln = _layer_norm_cmajor(x, ln1w_ref[...], ln1b_ref[...]).astype(jnp.bfloat16)
    qkv = jnp.dot(ipw_ref[...], x_ln, preferred_element_type=jnp.float32) + ipb_ref[...]
    q_ref[0] = qkv[0 * C:1 * C].astype(q_ref.dtype)
    k_ref[0] = qkv[1 * C:2 * C].astype(k_ref.dtype)
    v_ref[0] = qkv[2 * C:3 * C].astype(v_ref.dtype)


# --------------------- Pass B: attention (q-tiled) + out-proj + FFN ---------------------
def attention_ffn_kernel(q_ref, k_ref, v_ref, xres_ref,
                         opw_ref, opb_ref, ln2w_ref, ln2b_ref,
                         f1w_ref, f1b_ref, f2w_ref, f2b_ref,
                         o_ref):
    # q_ref: (1, C, TQ) bf16; k_ref / v_ref: (1, C, S) bf16; xres_ref / o_ref: (1, C, TQ) f32.
    C, TQ = q_ref.shape[1], q_ref.shape[2]
    S = k_ref.shape[2]
    H = NUM_HEADS
    D = C // H

    q = q_ref[0].reshape(H, D, TQ)          # 1/sqrt(D) already folded into the weights
    k = k_ref[0].reshape(H, D, S)
    v = v_ref[0].reshape(H, D, S)

    # Scores: contract over D, batched over heads -> (H, TQ, S), f32 accumulation.
    s = lax.dot_general(q, k, dimension_numbers=(((1,), (1,)), ((0,), (0,))),
                        preferred_element_type=jnp.float32)
    s = s - jnp.max(s, axis=-1, keepdims=True)
    p = jnp.exp(s)
    l = jnp.sum(p, axis=-1)                 # (H, TQ) row sums (>= 1 after max-subtraction)

    # PV: contract over S_k -> (H, D, TQ).  Softmax normalization deferred to this
    # (S/D x smaller) tensor; approx reciprocal runs on the otherwise-idle EUP slot.
    o = lax.dot_general(v, p.astype(jnp.bfloat16),
                        dimension_numbers=(((2,), (2,)), ((0,), (0,))),
                        preferred_element_type=jnp.float32)
    o = o * pl.reciprocal(l, approx=True)[:, None, :]
    attn = o.reshape(C, TQ)

    # Output projection + residual with the pre-LN input tile (read where needed).
    attn = jnp.dot(opw_ref[...], attn.astype(jnp.bfloat16),
                   preferred_element_type=jnp.float32) + opb_ref[...]
    attn = attn + xres_ref[0]

    # Feed-forward: LN -> Linear -> GELU -> Linear, + residual.
    h = _layer_norm_cmajor(attn, ln2w_ref[...], ln2b_ref[...])
    h = jnp.dot(f1w_ref[...], h.astype(jnp.bfloat16),
                preferred_element_type=jnp.float32) + f1b_ref[...]
    h = jax.nn.gelu(h, approximate=USE_TANH_GELU)
    h = jnp.dot(f2w_ref[...], h.astype(jnp.bfloat16),
                preferred_element_type=jnp.float32) + f2b_ref[...]
    o_ref[0] = (h + attn).astype(o_ref.dtype)


# ----------------------------------- Host-side wrapper -----------------------------------
def _prepare_kernel_params(params, channels):
    """PyTorch-layout params -> kernel layouts.

    Matmul weights stay in (out, in) order (used as W @ X on channel-major activations)
    stored bf16; biases / LN params become f32 (out, 1) columns broadcasting along the
    lane axis.  1/sqrt(head_dim) is folded into the Q rows of the in-projection.
    """
    (ln1w, ln1b, ipw, ipb, opw, opb, ln2w, ln2b, f1w, f1b, f2w, f2b) = params
    C = channels
    scale = 1.0 / float(C // NUM_HEADS) ** 0.5
    ipw = ipw.astype(jnp.float32).at[:C].multiply(scale)
    ipb = ipb.astype(jnp.float32).at[:C].multiply(scale)
    col = lambda a: a.reshape(-1, 1).astype(jnp.float32)
    bf = lambda a: a.astype(jnp.bfloat16)
    qkv_params = (col(ln1w), col(ln1b), bf(ipw), col(ipb))
    attn_params = (bf(opw), col(opb), col(ln2w), col(ln2b),
                   bf(f1w), col(f1b), bf(f2w), col(f2b))
    return qkv_params, attn_params


def _pick_q_tile(S):
    # Last block dim must be a multiple of 128 or the full extent.
    for tq in (256, 128):
        if S > tq and S % tq == 0:
            return tq
    return S


def _vmem_limit_bytes():
    # Generation-aware scoped-VMEM limit: ~96 MiB on v5e/v6e (128 MiB physical),
    # ~48 MiB on v7x (64 MiB physical); safe fallback if the query is unavailable.
    try:
        phys = int(pltpu.get_tpu_info().vmem_capacity_bytes)
    except Exception:
        phys = 128 * 1024 * 1024
    return min(int(phys * 3 // 4), 100 * 1024 * 1024)


def self_attention_pallas(x_nchw, params):
    B, C, Hs, Ws = x_nchw.shape
    S = Hs * Ws
    assert C % NUM_HEADS == 0

    # NCHW -> (B, C, S): pure reshape, no transpose / extra HBM pass.
    x_seq = x_nchw.reshape(B, C, S).astype(jnp.float32)
    qkv_params, attn_params = _prepare_kernel_params(params, C)

    TQ = _pick_q_tile(S)
    n_q = S // TQ
    vmem_limit = _vmem_limit_bytes()

    def full_spec(arr):
        zeros = (0,) * arr.ndim
        return pl.BlockSpec(arr.shape, lambda b, t, _z=zeros: _z)

    tile_spec = pl.BlockSpec((1, C, TQ), lambda b, t: (b, 0, t))      # q-tile of columns
    slab_spec = pl.BlockSpec((1, C, S), lambda b, t: (b, 0, 0))       # full-S K/V slab

    compiler_params = pltpu.CompilerParams(
        dimension_semantics=("parallel", "parallel"),
        vmem_limit_bytes=vmem_limit)

    # ---- Pass A: LN1 + QKV projection -> bf16 Q/K/V slabs in HBM ----
    wbytes_a = sum(int(a.size) * a.dtype.itemsize for a in qkv_params)
    qkv_shape = jax.ShapeDtypeStruct((B, C, S), jnp.bfloat16)
    q_proj, k_proj, v_proj = pl.pallas_call(
        qkv_projection_kernel,
        out_shape=(qkv_shape, qkv_shape, qkv_shape),
        grid_spec=pltpu.PrefetchScalarGridSpec(
            num_scalar_prefetch=0,
            grid=(B, n_q),
            in_specs=[tile_spec] + [full_spec(w) for w in qkv_params],
            out_specs=[tile_spec, tile_spec, tile_spec],
        ),
        compiler_params=compiler_params,
        cost_estimate=pl.CostEstimate(
            flops=int(2 * B * S * 3 * C * C),
            transcendentals=0,
            bytes_accessed=int(B * C * S * (4 + 3 * 2) + wbytes_a)),
    )(x_seq, *qkv_params)

    # ---- Pass B: q-tiled attention + output projection + FFN ----
    wbytes_b = sum(int(a.size) * a.dtype.itemsize for a in attn_params)
    out_seq = pl.pallas_call(
        attention_ffn_kernel,
        out_shape=jax.ShapeDtypeStruct((B, C, S), jnp.float32),
        grid_spec=pltpu.PrefetchScalarGridSpec(
            num_scalar_prefetch=0,
            grid=(B, n_q),
            in_specs=[tile_spec, slab_spec, slab_spec, tile_spec]
                     + [full_spec(w) for w in attn_params],
            out_specs=tile_spec,
        ),
        compiler_params=compiler_params,
        cost_estimate=pl.CostEstimate(
            flops=int(2 * B * S * C * (2 * S + 3 * C)),
            transcendentals=int(B * (NUM_HEADS * S * S + C * S)),
            bytes_accessed=int(B * C * S * (3 * 2 + 2 * 4) + wbytes_b)),
    )(q_proj, k_proj, v_proj, x_seq, *attn_params)

    # (B, C, S) -> NCHW: pure reshape again.
    return out_seq.reshape(B, C, Hs, Ws)


# ----------------------------- Params + pure-JAX reference -----------------------------
def make_params(key, channels):
    """Parameters in native PyTorch layouts: Linear W (out, in), b (out,), LN (C,)."""
    C = channels
    ks = jax.random.split(key, 8)
    scale = 0.02
    ln1w = jnp.ones((C,), jnp.float32)
    ln1b = jnp.zeros((C,), jnp.float32)
    ipw = scale * jax.random.normal(ks[0], (3 * C, C), jnp.float32)
    ipb = scale * jax.random.normal(ks[1], (3 * C,), jnp.float32)
    opw = scale * jax.random.normal(ks[2], (C, C), jnp.float32)
    opb = scale * jax.random.normal(ks[3], (C,), jnp.float32)
    ln2w = jnp.ones((C,), jnp.float32)
    ln2b = jnp.zeros((C,), jnp.float32)
    f1w = scale * jax.random.normal(ks[4], (C, C), jnp.float32)
    f1b = scale * jax.random.normal(ks[5], (C,), jnp.float32)
    f2w = scale * jax.random.normal(ks[6], (C, C), jnp.float32)
    f2b = scale * jax.random.normal(ks[7], (C,), jnp.float32)
    return (ln1w, ln1b, ipw, ipb, opw, opb, ln2w, ln2b, f1w, f1b, f2w, f2b)


def self_attention_reference(x_nchw, params):
    """Pure-JAX f32 reference mirroring the PyTorch forward (exact-erf GELU)."""
    (ln1w, ln1b, ipw, ipb, opw, opb, ln2w, ln2b, f1w, f1b, f2w, f2b) = params
    B, C, Hs, Ws = x_nchw.shape
    S = Hs * Ws
    D = C // NUM_HEADS
    x = x_nchw.reshape(B, C, S).transpose(0, 2, 1).astype(jnp.float32)  # (B, S, C)

    def ln(v, w, b):
        mu = jnp.mean(v, -1, keepdims=True)
        var = jnp.mean((v - mu) ** 2, -1, keepdims=True)
        return (v - mu) / jnp.sqrt(var + LN_EPS) * w + b

    x_ln = ln(x, ln1w, ln1b)
    qkv = jnp.einsum("bsc,dc->bsd", x_ln, ipw) + ipb
    q, k, v = qkv[..., :C], qkv[..., C:2 * C], qkv[..., 2 * C:]
    q = q.reshape(B, S, NUM_HEADS, D).transpose(0, 2, 1, 3)
    k = k.reshape(B, S, NUM_HEADS, D).transpose(0, 2, 1, 3)
    v = v.reshape(B, S, NUM_HEADS, D).transpose(0, 2, 1, 3)
    s = jnp.einsum("bhqd,bhkd->bhqk", q, k) / jnp.sqrt(D).astype(jnp.float32)
    p = jax.nn.softmax(s, axis=-1)
    o = jnp.einsum("bhqk,bhkd->bhqd", p, v)
    o = o.transpose(0, 2, 1, 3).reshape(B, S, C)
    attn = jnp.einsum("bsc,dc->bsd", o, opw) + opb + x
    hff = ln(attn, ln2w, ln2b)
    hff = jnp.einsum("bsc,dc->bsd", hff, f1w) + f1b
    hff = jax.nn.gelu(hff, approximate=False)
    hff = jnp.einsum("bsc,dc->bsd", hff, f2w) + f2b
    out = hff + attn
    return out.transpose(0, 2, 1).reshape(B, C, Hs, Ws)


if __name__ == "__main__":
    import numpy as np

    B, C, Hs, Ws = 2, 32, 16, 16   # channels divisible by 4 heads; S = 256, TQ = 128
    key = jax.random.PRNGKey(0)
    kx, kp = jax.random.split(key)
    x = jax.random.normal(kx, (B, C, Hs, Ws), jnp.float32)
    params = make_params(kp, C)

    out = jax.block_until_ready(self_attention_pallas(x, params))
    ref = jax.block_until_ready(self_attention_reference(x, params))

    # bf16 matmul inputs, tanh GELU, and approx reciprocal -> bf16-level tolerance.
    np.testing.assert_allclose(np.asarray(out), np.asarray(ref),
                               rtol=1e-2, atol=1e-2)
    print("KERNEL_OK")
</pallas_src>

<mosaic_0001>
module attributes {stable_mosaic.version = 11 : i64} {
  func.func @qkv_projection_kernel(%arg0: i32, %arg1: i32, %arg2: memref<1x32x128xf32, #tpu.memory_space<vmem>>, %arg3: memref<32x1xf32, #tpu.memory_space<vmem>>, %arg4: memref<32x1xf32, #tpu.memory_space<vmem>>, %arg5: memref<96x32xbf16, #tpu.memory_space<vmem>>, %arg6: memref<96x1xf32, #tpu.memory_space<vmem>>, %arg7: memref<1x32x128xbf16, #tpu.memory_space<vmem>>, %arg8: memref<1x32x128xbf16, #tpu.memory_space<vmem>>, %arg9: memref<1x32x128xbf16, #tpu.memory_space<vmem>>) attributes {dimension_semantics = [#tpu.dimension_semantics<parallel>, #tpu.dimension_semantics<parallel>], iteration_bounds = array<i64: 2, 2>, scalar_prefetch = 0 : i64, scratch_operands = 0 : i64, tpu.core_type = #tpu.core_type<tc>, window_params = [{transform_indices = @transform_0, window_bounds = array<i64: 1, 32, 128>}, {pipeline_mode = #tpu.pipeline_mode<synchronous>, transform_indices = @transform_1, window_bounds = array<i64: 32, 1>}, {pipeline_mode = #tpu.pipeline_mode<synchronous>, transform_indices = @transform_2, window_bounds = array<i64: 32, 1>}, {pipeline_mode = #tpu.pipeline_mode<synchronous>, transform_indices = @transform_3, window_bounds = array<i64: 96, 32>}, {pipeline_mode = #tpu.pipeline_mode<synchronous>, transform_indices = @transform_4, window_bounds = array<i64: 96, 1>}, {transform_indices = @transform_5, window_bounds = array<i64: 1, 32, 128>}, {transform_indices = @transform_6, window_bounds = array<i64: 1, 32, 128>}, {transform_indices = @transform_7, window_bounds = array<i64: 1, 32, 128>}]} {
    %c0 = arith.constant 0 : index
    %c0_0 = arith.constant 0 : index
    %c0_1 = arith.constant 0 : index
    %0 = vector.load %arg2[%c0, %c0_0, %c0_1] : memref<1x32x128xf32, #tpu.memory_space<vmem>>, vector<1x32x128xf32>
    %1 = vector.shape_cast %0 : vector<1x32x128xf32> to vector<32x128xf32>
    %c0_2 = arith.constant 0 : index
    %c0_3 = arith.constant 0 : index
    %2 = vector.load %arg3[%c0_2, %c0_3] : memref<32x1xf32, #tpu.memory_space<vmem>>, vector<32x1xf32>
    %c0_4 = arith.constant 0 : index
    %c0_5 = arith.constant 0 : index
    %3 = vector.load %arg4[%c0_4, %c0_5] : memref<32x1xf32, #tpu.memory_space<vmem>>, vector<32x1xf32>
    %cst = arith.constant dense<0.000000e+00> : vector<128xf32>
    %4 = vector.multi_reduction <add>, %1, %cst [0] : vector<32x128xf32> to vector<128xf32>
    %5 = vector.shape_cast %4 : vector<128xf32> to vector<1x128xf32>
    %cst_6 = arith.constant 3.200000e+01 : f32
    %6 = vector.broadcast %cst_6 : f32 to vector<1x128xf32>
    %7 = arith.divf %5, %6 : vector<1x128xf32>
    %8 = arith.mulf %1, %1 : vector<32x128xf32>
    %cst_7 = arith.constant dense<0.000000e+00> : vector<128xf32>
    %9 = vector.multi_reduction <add>, %8, %cst_7 [0] : vector<32x128xf32> to vector<128xf32>
    %10 = vector.shape_cast %9 : vector<128xf32> to vector<1x128xf32>
    %cst_8 = arith.constant 3.200000e+01 : f32
    %11 = vector.broadcast %cst_8 : f32 to vector<1x128xf32>
    %12 = arith.divf %10, %11 : vector<1x128xf32>
    %13 = arith.mulf %7, %7 : vector<1x128xf32>
    %14 = arith.subf %12, %13 : vector<1x128xf32>
    %cst_9 = arith.constant 0.000000e+00 : f32
    %15 = vector.broadcast %cst_9 : f32 to vector<1x128xf32>
    %16 = arith.maximumf %14, %15 : vector<1x128xf32>
    %17 = vector.broadcast %7 : vector<1x128xf32> to vector<32x128xf32>
    %18 = arith.subf %1, %17 : vector<32x128xf32>
    %cst_10 = arith.constant 9.99999974E-6 : f32
    %19 = vector.broadcast %cst_10 : f32 to vector<1x128xf32>
    %20 = arith.addf %16, %19 : vector<1x128xf32>
    %21 = math.rsqrt %20 : vector<1x128xf32>
    %22 = vector.broadcast %21 : vector<1x128xf32> to vector<32x128xf32>
    %23 = arith.mulf %18, %22 : vector<32x128xf32>
    %24 = vector.broadcast %2 : vector<32x1xf32> to vector<32x128xf32>
    %25 = arith.mulf %23, %24 : vector<32x128xf32>
    %26 = vector.broadcast %3 : vector<32x1xf32> to vector<32x128xf32>
    %27 = arith.addf %25, %26 : vector<32x128xf32>
    %28 = arith.truncf %27 : vector<32x128xf32> to vector<32x128xbf16>
    %c0_11 = arith.constant 0 : index
    %c0_12 = arith.constant 0 : index
    %29 = vector.load %arg5[%c0_11, %c0_12] : memref<96x32xbf16, #tpu.memory_space<vmem>>, vector<96x32xbf16>
    %cst_13 = arith.constant dense<0.000000e+00> : vector<96x128xf32>
    %30 = tpu.matmul %29, %28, %cst_13 {dimension_numbers = #tpu.dot_dimension_numbers<[1], [0], [0], [1], [0, 0, 1, 1], [], []>} : vector<96x32xbf16>, vector<32x128xbf16>, vector<96x128xf32> -> vector<96x128xf32>
    %c0_14 = arith.constant 0 : index
    %c0_15 = arith.constant 0 : index
    %31 = vector.load %arg6[%c0_14, %c0_15] : memref<96x1xf32, #tpu.memory_space<vmem>>, vector<96x1xf32>
    %32 = vector.broadcast %31 : vector<96x1xf32> to vector<96x128xf32>
    %33 = arith.addf %30, %32 : vector<96x128xf32>
    %34 = vector.extract_strided_slice %33 {offsets = [0, 0], sizes = [32, 128], strides = [1, 1]} : vector<96x128xf32> to vector<32x128xf32>
    %35 = arith.truncf %34 : vector<32x128xf32> to vector<32x128xbf16>
    %c0_16 = arith.constant 0 : index
    %c0_17 = arith.constant 0 : index
    %c0_18 = arith.constant 0 : index
    %36 = vector.load %arg7[%c0_16, %c0_17, %c0_18] : memref<1x32x128xbf16, #tpu.memory_space<vmem>>, vector<1x32x128xbf16>
    %37 = vector.shape_cast %36 : vector<1x32x128xbf16> to vector<32x128xbf16>
    %38 = vector.shape_cast %35 : vector<32x128xbf16> to vector<1x32x128xbf16>
    tpu.vector_store %arg7[%c0_16, %c0_17, %c0_18], %38 {strides = array<i32>} : memref<1x32x128xbf16, #tpu.memory_space<vmem>>, vector<1x32x128xbf16>,
    %39 = vector.extract_strided_slice %33 {offsets = [32, 0], sizes = [32, 128], strides = [1, 1]} : vector<96x128xf32> to vector<32x128xf32>
    %40 = arith.truncf %39 : vector<32x128xf32> to vector<32x128xbf16>
    %c0_19 = arith.constant 0 : index
    %c0_20 = arith.constant 0 : index
    %c0_21 = arith.constant 0 : index
    %41 = vector.load %arg8[%c0_19, %c0_20, %c0_21] : memref<1x32x128xbf16, #tpu.memory_space<vmem>>, vector<1x32x128xbf16>
    %42 = vector.shape_cast %41 : vector<1x32x128xbf16> to vector<32x128xbf16>
    %43 = vector.shape_cast %40 : vector<32x128xbf16> to vector<1x32x128xbf16>
    tpu.vector_store %arg8[%c0_19, %c0_20, %c0_21], %43 {strides = array<i32>} : memref<1x32x128xbf16, #tpu.memory_space<vmem>>, vector<1x32x128xbf16>,
    %44 = vector.extract_strided_slice %33 {offsets = [64, 0], sizes = [32, 128], strides = [1, 1]} : vector<96x128xf32> to vector<32x128xf32>
    %45 = arith.truncf %44 : vector<32x128xf32> to vector<32x128xbf16>
    %c0_22 = arith.constant 0 : index
    %c0_23 = arith.constant 0 : index
    %c0_24 = arith.constant 0 : index
    %46 = vector.load %arg9[%c0_22, %c0_23, %c0_24] : memref<1x32x128xbf16, #tpu.memory_space<vmem>>, vector<1x32x128xbf16>
    %47 = vector.shape_cast %46 : vector<1x32x128xbf16> to vector<32x128xbf16>
    %48 = vector.shape_cast %45 : vector<32x128xbf16> to vector<1x32x128xbf16>
    tpu.vector_store %arg9[%c0_22, %c0_23, %c0_24], %48 {strides = array<i32>} : memref<1x32x128xbf16, #tpu.memory_space<vmem>>, vector<1x32x128xbf16>,
    return
  }
  func.func @transform_0(%arg0: i32, %arg1: i32) -> (i32, i32, i32) {
    %c0_i32 = arith.constant 0 : i32
    %c0_i32_0 = arith.constant 0 : i32
    return %arg0, %c0_i32, %arg1 : i32, i32, i32
  }
  func.func @transform_1(%arg0: i32, %arg1: i32) -> (i32, i32) {
    %c0_i32 = arith.constant 0 : i32
    %c0_i32_0 = arith.constant 0 : i32
    %c0_i32_1 = arith.constant 0 : i32
    return %c0_i32, %c0_i32_0 : i32, i32
  }
  func.func @transform_2(%arg0: i32, %arg1: i32) -> (i32, i32) {
    %c0_i32 = arith.constant 0 : i32
    %c0_i32_0 = arith.constant 0 : i32
    %c0_i32_1 = arith.constant 0 : i32
    return %c0_i32, %c0_i32_0 : i32, i32
  }
  func.func @transform_3(%arg0: i32, %arg1: i32) -> (i32, i32) {
    %c0_i32 = arith.constant 0 : i32
    %c0_i32_0 = arith.constant 0 : i32
    %c0_i32_1 = arith.constant 0 : i32
    return %c0_i32, %c0_i32_0 : i32, i32
  }
  func.func @transform_4(%arg0: i32, %arg1: i32) -> (i32, i32) {
    %c0_i32 = arith.constant 0 : i32
    %c0_i32_0 = arith.constant 0 : i32
    %c0_i32_1 = arith.constant 0 : i32
    return %c0_i32, %c0_i32_0 : i32, i32
  }
  func.func @transform_5(%arg0: i32, %arg1: i32) -> (i32, i32, i32) {
    %c0_i32 = arith.constant 0 : i32
    %c0_i32_0 = arith.constant 0 : i32
    return %arg0, %c0_i32, %arg1 : i32, i32, i32
  }
  func.func @transform_6(%arg0: i32, %arg1: i32) -> (i32, i32, i32) {
    %c0_i32 = arith.constant 0 : i32
    %c0_i32_0 = arith.constant 0 : i32
    return %arg0, %c0_i32, %arg1 : i32, i32, i32
  }
  func.func @transform_7(%arg0: i32, %arg1: i32) -> (i32, i32, i32) {
    %c0_i32 = arith.constant 0 : i32
    %c0_i32_0 = arith.constant 0 : i32
    return %arg0, %c0_i32, %arg1 : i32, i32, i32
  }
}

</mosaic_0001>

<bundles_post_ra>
// kernel: tpu_custom_call.1
= control target key start
LH: loop header
LB: loop body
LE: loop exit
PB: predicated region body
PF: predicated region fallthrough
CT: control target
= control target key end

     0   :  { %s1697_s0 = inlined_call_operand.vmem [shape: f32[2,32,256], index: 0, kind: input, shape index: {}]   ;;  %s1698_s1 = inlined_call_operand.vmem [shape: f32[32,1], index: 1, kind: input, shape index: {}]   ;;  %s1699_s2 = inlined_call_operand.vmem [shape: f32[32,1], index: 2, kind: input, shape index: {}]   ;;  %s1700_s3 = inlined_call_operand.vmem [shape: bf16[96,32], index: 3, kind: input, shape index: {}]   ;;  %s1701_s4 = inlined_call_operand.vmem [shape: f32[96,1], index: 4, kind: input, shape index: {}]   ;;  %s1702_s5 = inlined_call_operand.hbm [shape: bf16[2,32,256], index: 5, kind: output, shape index: {0}]   ;;  %s1703_s6 = inlined_call_operand.hbm [shape: bf16[2,32,256], index: 6, kind: output, shape index: {1}]   ;;  %s1704_s7 = inlined_call_operand.hbm [shape: bf16[2,32,256], index: 7, kind: output, shape index: {2}]  }
   0x1   :  { %1710 = sst [smem:[#allocation11_spill]] %s1697_s0 }
   0x2   :  { %1711 = sst [smem:[#allocation12_spill]] %s1698_s1 }
   0x3   :  { %1712 = sst [smem:[#allocation13_spill]] %s1699_s2 }
   0x4   :  { %1713 = sst [smem:[#allocation14_spill]] %s1700_s3 }
   0x5   :  { %13 = vsyncpa [#allocation4], 0 }
   0x6   :  { %15 = vsyncpa [#allocation4 + $0x1], 0 }
   0x7   :  { %16 = vsyncpa [#allocation6], 0 }
   0x8   :  { %18 = vsyncpa [#allocation6 + $0x1], 0  ;;  %s1358_s24 = smov 0   ;;  %s1360_s25 = smov 0  }
   0x9   :  { %s1362_s26 = smov 0   ;;  %s1364_s27 = smov 0  }
   0xa   :  { %s1366_s28 = smov 0   ;;  %s1368_s29 = smov 0  }
   0xb   :  { %s1370_s30 = smov 0   ;;  %s1372_s8 = smov 0  }
   0xc LB: > { %s1706_s9 = sadd.s32 4294967295, %s1309_s8   ;;  %s1705_s10 = sadd.s32 4294967294, %s1309_s8   ;;  %s1309_s8 = sphi %s1372_s8, %s24_s8   ;;  %s1305_s30 = sphi %s1370_s30, %s1734_s30   ;;  %s1301_s29 = sphi %s1368_s29, %s1733_s29   ;;  %s1297_s28 = sphi %s1366_s28, %s1732_s28   ;;  %s1293_s27 = sphi %s1364_s27, %s1731_s27   ;;  %s1289_s26 = sphi %s1362_s26, %s1730_s26   ;;  %s1285_s25 = sphi %s1360_s25, %s1729_s25   ;;  %s1281_s24 = sphi %s1358_s24, %s1728_s24  }
   0xd   : > { %s33_s11 = sadd.s32 1, %s1301_s29  ;;  %s36_s12 = sadd.s32 1, %s1305_s30 }
   0xe   : > { %p34_p0 = scmp.ge.s32.totalorder %s33_s11, 2  ;;  %p52_p1 = scmp.ne.s32.totalorder %s1289_s26, %s1285_s25 }
   0xf   : > { %p53_p2 = scmp.eq.s32.totalorder %s1309_s8, 0  ;;  %p168_p5 = scmp.eq.s32.totalorder %s1706_s9, 3 }
  0x10   : > { %s1736_s11 = smov (%p34_p0, %s33_s11), 0  ;;  %s1738_s12 = smov (!%p34_p0, %s36_s12), %s1305_s30 }
  0x11   : > { %s41_s13 = ssub.s32 %s1301_s29, %s1736_s11  ;;  %p1410_p3 = por %p53_p2, %p52_p1 }
  0x12   : > { %p38_p4 = scmp.ge.s32.totalorder %s1738_s12, 2  ;;  %p173_p6 = scmp.ne.s32.totalorder %s1285_s25, %s1281_s24 }
  0x13   : > { %p174_p7 = scmp.eq.s32.totalorder %s1705_s10, 3  ;;  %p1422_p8 = por %p168_p5, %p52_p1 }
  0x14   : > { %s1740_s12 = smov (%p38_p4, %s1738_s12), 0  ;;  %s45_s19 = sadd.s32 1, %s1289_s26 }
  0x15   : > { %1715 = sst [smem:[#allocation10_spill]] %s1740_s12  ;;  %p1426_p9 = por %p174_p7, %p173_p6 }
  0x16   : > { %s40_s17 = ssub.s32 %s1305_s30, %s1740_s12  ;;  %p949_p11 = scmp.ge.s32.totalorder %s1309_s8, 4 }
  0x17   : > { %s42_s18 = sor.u32 %s41_s13, %s40_s17 }
  0x18   : > { %p43_p10 = scmp.eq.s32.totalorder %s42_s18, 0  ;;  %258 = sbr.rel (%p949_p11) target bundleno = 41 (0x29), region = 32 }
  0x1a   : > { %s1434_s20 = scalar_select %p43_p10, %s1289_s26, %s45_s19  }
  0x1d   : > { %261 = sbr.rel (!%p1410_p3) target bundleno = 41 (0x29), region = 36  ;;  %s263_s21 = sand.u32 (%p1410_p3), 1, %s1289_s26  }
  0x1e   : > { %s951_s22 = sshll.u32 (%p1410_p3), %s1305_s30, 3  ;;  %s950_s23 = sshll.u32 (%p1410_p3), %s263_s21, 5 }
  0x1f   : > { %s267_s10 = sadd.s32 (%p1410_p3), %s1301_s29, %s951_s22  ;;  %s1718_s0 = sld [smem:[#allocation11_spill]] (%p1410_p3) }
  0x20   : > { %s952_s9 = sshll.u32 (%p1410_p3), %s267_s10, 3  ;;  %s265_s18 = scalar_lea.vmem (%p1410_p3), [#allocation2], %s950_s23 }
  0x25   : > { %s269_s17 = scalar_lea.vmem %s1718_s0, %s952_s9 }
  0x26   : > { %v304_v0 = vld [vmem:[%s269_s17] sm:$0xff]  ;;  %v306_v1 = vld [vmem:[%s269_s17 + $0x10] sm:$0xff] }
  0x27   : > { %v308_v2 = vld [vmem:[%s269_s17 + $0x20] sm:$0xff]  ;;  %305 = vst [vmem:[%s265_s18] sm:$0xff] %v304_v0  ;;  %307 = vst [vmem:[%s265_s18 + $0x8] sm:$0xff] %v306_v1  ;;  %v310_v3 = vld [vmem:[%s269_s17 + $0x30] sm:$0xff] }
  0x28   : > { %309 = vst [vmem:[%s265_s18 + $0x10] sm:$0xff] %v308_v2  ;;  %311 = vst [vmem:[%s265_s18 + $0x18] sm:$0xff] %v310_v3 }
  0x29 PF: > { %p953_p12 = scmp.ge.s32.totalorder %s1309_s8, 1  ;;  %p316_p13 = scmp.lt.s32.totalorder %s1309_s8, 5 }
  0x2b   : > { %p317_p0 = pnand %p953_p12, %p316_p13 }
  0x2c   : > { %s1719_s2 = sld [smem:[#allocation13_spill]] (!%p317_p0)  ;;  %s1516_s10 = sand.u32 (!%p317_p0), 1, %s1285_s25  }
  0x2d   : > { %320 = sbr.rel (%p317_p0) target bundleno = 461 (0x1cd), region = 74  ;;  %s1720_s1 = sld [smem:[#allocation12_spill]] (!%p317_p0) }
  0x2e   : > { %s1721_s3 = sld [smem:[#allocation14_spill]] (!%p317_p0)  ;;  %s954_s12 = sshll.u32 (!%p317_p0), %s1516_s10, 5 }
  0x2f   : > { %s325_s9 = scalar_lea.vmem (!%p317_p0), [#allocation2], %s954_s12  ;;  %s1536_s12 = sshll.u32 (!%p317_p0), %s1516_s10, 4 }
  0x30   : > { %s1540_s14 = scalar_lea.vmem (!%p317_p0), [#allocation3], %s1536_s12  ;;  %s1545_s22 = scalar_lea.vmem (!%p317_p0), [#allocation5], %s1536_s12 }
  0x31   : > { %s764_s19 = sshll.u32 (!%p317_p0), %s1540_s14, 4  ;;  %s781_s23 = sshll.u32 (!%p317_p0), %s1545_s22, 4  ;;  %s1556_s19 = int_to_ptr.vmem [resolvable:$true] %s764_s19  ;;  %s1560_s23 = int_to_ptr.vmem [resolvable:$true] %s781_s23 }
  0x32   : > { %v375_v4 = vld [vmem:[%s1719_s2 + $0x10] sm:$0xff]  ;;  %v1311_v6 = vmov 0   ;;  %v376_v7 = vld [vmem:[%s1719_s2 + $0x18] sm:$0xff]  ;;  %v374_v11 = vld [vmem:[%s1719_s2 + $0x8] sm:$0xff]  ;;  %vm579_vm0 = vcmask 261120   ;;  %s1722_s13 = sadd.s32 4294967295, %s1309_s8  }
  0x33   : > { %v371_v5 = vld [vmem:[%s1720_s1 + $0x10] sm:$0xff]  ;;  %1152 = vset.pattern.permute.xlu1 %v1311_v6  ;;  %1151 = vset.pattern.permute.xlu0 %v1311_v6  ;;  %v372_v8 = vld [vmem:[%s1720_s1 + $0x18] sm:$0xff]  ;;  %v370_v9 = vld [vmem:[%s1720_s1 + $0x8] sm:$0xff]  ;;  %s1550_s17 = sand.u32 1, %s1722_s13  }
  0x34   : > { %451 = vperm.xlu1 %1152, %v375_v4   ;;  %427 = vperm.xlu0 %1151, %v371_v5   ;;  %v369_v10 = vld [vmem:[%s1720_s1] sm:$0xff]  ;;  %v482_v13 = vld [vmem:[%s1701_s4 + $0x28] sm:$0xff]  ;;  %v1154_v16 = vld [vmem:[%s1721_s3 + $0x10] sm:$0xff]  }
  0x35   : > { %v373_v12 = vld [vmem:[%s1719_s2] sm:$0xff]  ;;  %1054 = vmatprep.mubr.msk.bf16.mxu1 %vm579_vm0, %v1154_v16  ;;  %v484_v17 = vld [vmem:[%s1701_s4 + $0x38] sm:$0xff]  ;;  %v483_v18 = vld [vmem:[%s1701_s4 + $0x30] sm:$0xff]  ;;  %s1161_s2 = scalar_lea.vmem %s1560_s23, 256 }
  0x36   : > { %v481_v14 = vld [vmem:[%s1701_s4 + $0x20] sm:$0xff]  ;;  %v478_v19 = vld [vmem:[%s1701_s4 + $0x8] sm:$0xff]  ;;  %v480_v21 = vld [vmem:[%s1701_s4 + $0x18] sm:$0xff]  ;;  %p1162_p1 = scmp.ne.s32.totalorder %s1560_s23, %s1161_s2 }
  0x37   : > { %v1153_v15 = vld [vmem:[%s1721_s3] sm:$0xff]   ;;  %v479_v22 = vld [vmem:[%s1701_s4 + $0x10] sm:$0xff]  ;;  %v486_v23 = vld [vmem:[%s1701_s4 + $0x48] sm:$0xff] }
  0x38   : > { %456 = vperm.xlu1 %1152, %v376_v7   ;;  %432 = vperm.xlu0 %1151, %v372_v8   ;;  %v477_v20 = vld [vmem:[%s1701_s4] sm:$0xff]  ;;  %v488_v25 = vld [vmem:[%s1701_s4 + $0x58] sm:$0xff]  ;;  %v487_v26 = vld [vmem:[%s1701_s4 + $0x50] sm:$0xff]  ;;  %p1163_p2 = pnand %p1162_p1, %p1422_p8 }
  0x39   : > { %1050 = vmatprep.mubr.msk.bf16.mxu0 %vm579_vm0, %v1153_v15  ;;  %v485_v24 = vld [vmem:[%s1701_s4 + $0x40] sm:$0xff]  ;;  %v366_v28 = vld [vmem:[%s325_s9 + $0x8] sm:$0xff]  ;;  %v367_v32 = vld [vmem:[%s325_s9 + $0x10] sm:$0xff] }
  0x3a   : > { %v365_v27 = vld [vmem:[%s325_s9] sm:$0xff]  ;;  %v389_v31 = vmul.f32 %v366_v28, %v366_v28  ;;  %v390_v34 = vmul.f32 %v367_v32, %v367_v32  ;;  %v368_v36 = vld [vmem:[%s325_s9 + $0x18] sm:$0xff]  ;;  %s985_s9 = sshll.u32 %s1297_s28, 3  ;;  %p1164_p3 = pneg %p1163_p2 }
  0x3b   : > { %v377_v29 = vadd.f32 %v366_v28, %v365_v27  ;;  %v388_v30 = vmul.f32 %v365_v27, %v365_v27  ;;  %v391_v38 = vmul.f32 %v368_v36, %v368_v36  ;;  %s761_s21 = sadd.s32 %s1293_s27, %s985_s9  ;;  %s1312_s28 = smov [#allocation5]  }
  0x3c   : > { %422 = vperm.xlu1 %1152, %v370_v9   ;;  %417 = vperm.xlu0 %1151, %v369_v10   ;;  %s1558_s27 = sshll.u32 %s761_s21, 6  ;;  %s1165_s18 = sshll.u32 %s1312_s28, 4  ;;  %s1166_s18 = int_to_ptr.vmem [resolvable:$false] %s1165_s18 }
  0x3d   : > { %v378_v33 = vadd.f32 %v377_v29, %v367_v32  ;;  %v392_v35 = vadd.f32 %v389_v31, %v388_v30  ;;  %s1568_s9 = scalar_lea.hbm %s1703_s6, %s1558_s27  ;;  %s1576_s0 = scalar_lea.hbm %s1702_s5, %s1558_s27 }
  0x3e   : > { %p1168_p4 = scmp.lt.s32.totalorder %s1560_s23, %s1166_s18 }
  0x3f   : > { %v379_v37 = vadd.f32 %v378_v33, %v368_v36  ;;  %v393_v39 = vadd.f32 %v392_v35, %v390_v34 }
  0x40   : > { %446 = vperm.xlu1 %1152, %v374_v11   ;;  %441 = vperm.xlu0 %1151, %v373_v12  }
  0x41   : > { %v380_v40 = vrot.slane %v379_v37, 4  ;;  %v394_v41 = vadd.f32 %v393_v39, %v391_v38 }
  0x43   : > { %v381_v42 = vadd.f32 %v380_v40, %v379_v37  ;;  %v395_v43 = vrot.slane %v394_v41, 4 }
  0x44   : > { %516 = vperm.xlu1 %1152, %v482_v13   ;;  %511 = vperm.xlu0 %1151, %v481_v14  }
  0x45   : > { %v382_v44 = vrot.slane %v381_v42, 2  ;;  %v396_v45 = vadd.f32 %v395_v43, %v394_v41 }
  0x47   : > { %v383_v46 = vadd.f32 %v382_v44, %v381_v42  ;;  %v397_v47 = vrot.slane %v396_v45, 2 }
  0x48   : > { %526 = vperm.xlu1 %1152, %v484_v17   ;;  %521 = vperm.xlu0 %1151, %v483_v18  }
  0x49   : > { %v384_v48 = vrot.slane %v383_v46, 1  ;;  %v398_v49 = vadd.f32 %v397_v47, %v396_v45 }
  0x4b   : > { %v385_v50 = vadd.f32 %v384_v48, %v383_v46  ;;  %v399_v51 = vrot.slane %v398_v49, 1 }
  0x4c   : > { %496 = vperm.xlu1 %1152, %v478_v19   ;;  %491 = vperm.xlu0 %1151, %v477_v20  }
  0x4d   : > { %v387_v52 = vmul.f32 0.03125, %v385_v50  ;;  %v400_v53 = vadd.f32 %v399_v51, %v398_v49 }
  0x4f   : > { %v401_v54 = vmul.f32 0.03125, %v400_v53  ;;  %v402_v55 = vmul.f32 %v387_v52, %v387_v52  ;;  %v407_v59 = vsub.f32 %v367_v32, %v387_v52  ;;  %v408_v61 = vsub.f32 %v368_v36, %v387_v52 }
  0x50   : > { %506 = vperm.xlu1 %1152, %v480_v21   ;;  %501 = vperm.xlu0 %1151, %v479_v22   ;;  %v406_v3 = vsub.f32 %v366_v28, %v387_v52  ;;  %v405_v4 = vsub.f32 %v365_v27, %v387_v52  ;;  %v1155_v22 = vld [vmem:[%s1721_s3 + $0x8] sm:$0xff]  }
  0x51   : > { %v403_v56 = vsub.f32 %v401_v54, %v402_v55 }
  0x53   : > { %v404_v57 = vmax.f32 %v403_v56, 0.0 }
  0x54   : > { %536 = vperm.xlu1 %1152, %v486_v23   ;;  %531 = vperm.xlu0 %1151, %v485_v24   ;;  %v1156_v23 = vld [vmem:[%s1721_s3 + $0x18] sm:$0xff]   ;;  %v1157_v24 = vld [vmem:[%s1721_s3 + $0x20] sm:$0xff]  }
  0x55   : > { %v409_v58 = vadd.f32 1e-05, %v404_v57 }
  0x57   : > { %1159 = vrsqrt.f32 %v409_v58 }
  0x58   : > { %546 = vperm.xlu1 %1152, %v488_v25   ;;  %541 = vperm.xlu0 %1151, %v487_v26   ;;  %v1158_v25 = vld [vmem:[%s1721_s3 + $0x28] sm:$0xff]   ;;  %s1167_s3 = scalar_lea.vmem %s1166_s18, 512 }
  0x59   : > { %p1169_p5 = scmp.lt.s32.totalorder %s1167_s3, %s1161_s2 }
  0x5b   : > { %p1170_p6 = por %p1169_p5, %p1168_p4 }
  0x5d   : > { %p1171_p7 = pnand %p1170_p6, %p1164_p3 }
  0x64   : > { %v1160_v60 = vpop.eup %1159 }
  0x65   : > { %v413_v62 = vmul.f32 %v1160_v60, %v407_v59  ;;  %v414_v1 = vmul.f32 %v1160_v60, %v408_v61  ;;  %v412_v10 = vmul.f32 %v1160_v60, %v406_v3  ;;  %v411_v11 = vmul.f32 %v1160_v60, %v405_v4 }
  0xaf   : > { %v452_v63 = vpop.permute.xlu1 %451  ;;  %v428_v0 = vpop.permute.xlu0 %427 }
  0xb0   : > { %v437_v2 = vmul.f32 %v428_v0, %v413_v62 }
  0xb2   : > { %v461_v8 = vadd.f32 %v452_v63, %v437_v2 }
  0xb3   : > { %v457_v5 = vpop.permute.xlu1 %456  ;;  %v433_v6 = vpop.permute.xlu0 %432 }
  0xb4   : > { %v438_v7 = vmul.f32 %v433_v6, %v414_v1 }
  0xb6   : > { %v462_v9 = vadd.f32 %v457_v5, %v438_v7 }
  0xb7   : > { %v423_v12 = vpop.permute.xlu1 %422  ;;  %v418_v13 = vpop.permute.xlu0 %417 }
  0xb8   : > { %v464_v14 = vpack.c.bf16 %v462_v9, %v461_v8  ;;  %v436_v15 = vmul.f32 %v423_v12, %v412_v10  ;;  %v435_v16 = vmul.f32 %v418_v13, %v411_v11 }
  0xba   : > { %1046 = vmatprep.subr.bf16.mxu0 %v464_v14  ;;  %1062 = vmatprep.subr.bf16.mxu1 %v464_v14 }
  0xbb   : > { %v447_v17 = vpop.permute.xlu1 %446  ;;  %v442_v18 = vpop.permute.xlu0 %441  ;;  %1047 = vmatpush3.bf16.msra.mxu0 %v464_v14  ;;  %1064 = vmatpush3.bf16.msra.mxu1 %v464_v14 }
  0xbc   : > { %v460_v19 = vadd.f32 %v447_v17, %v436_v15  ;;  %v459_v20 = vadd.f32 %v442_v18, %v435_v16 }
  0xbe   : > { %v463_v21 = vpack.c.bf16 %v460_v19, %v459_v20 }
  0xbf   : > { %v517_v26 = vpop.permute.xlu1 %516  ;;  %v512_v27 = vpop.permute.xlu0 %511 }
  0xc0   : > { %1048 = vmatprep.subr.bf16.mxu0 %v463_v21  ;;  %1063 = vmatprep.subr.bf16.mxu1 %v463_v21 }
  0xc1   : > { %1049 = vmatpush3.bf16.msra.mxu0 %v463_v21  ;;  %1065 = vmatpush3.bf16.msra.mxu1 %v463_v21 }
  0xc3   : > { %v527_v28 = vpop.permute.xlu1 %526  ;;  %v522_v29 = vpop.permute.xlu0 %521 }
  0xc4   : > { %1051 = vmatmul.mubr.msk.bf16.vlgmr.msra.gmra.mxu0 %vm579_vm0, %v1155_v22  ;;  %1055 = vmatmul.mubr.msk.bf16.vlgmr.msra.gmra.mxu1 %vm579_vm0, %v1156_v23 }
  0xc5   : > { %1058 = vmatprep.mubr.msk.bf16.mxu1 %vm579_vm0, %v1157_v24 }
  0xc7   : > { %v497_v30 = vpop.permute.xlu1 %496  ;;  %v492_v31 = vpop.permute.xlu0 %491 }
  0xcb   : > { %v507_v32 = vpop.permute.xlu1 %506  ;;  %v502_v33 = vpop.permute.xlu0 %501 }
  0xcc   : > { %1059 = vmatmul.mubr.msk.bf16.gmra.mxu1 %vm579_vm0, %v1158_v25 }
  0xcf   : > { %v1552_v40 = vpop.permute.xlu1 %536  ;;  %v1554_v41 = vpop.permute.xlu0 %531 }
  0xd3   : > { %v547_v58 = vpop.permute.xlu1 %546  ;;  %v542_v59 = vpop.permute.xlu0 %541 }
 0x184   : > { %v1052_v34 = vpop.f32.mrf.mxu0  ;;  %v1056_v35 = vpop.f32.mrf.mxu1 }
 0x185   : > { %v641_v42 = vadd.f32 %v1052_v34, %v502_v33  ;;  %v657_v43 = vadd.f32 %v1056_v35, %v522_v29 }
 0x186   : > { %v632_v36 = vpop.f32.mrf.mxu0  ;;  %v648_v37 = vpop.f32.mrf.mxu1 }
 0x187   : > { %v633_v46 = vadd.f32 %v632_v36, %v492_v31  ;;  %v649_v47 = vadd.f32 %v648_v37, %v512_v27 }
 0x188   : > { %v1053_v38 = vpop.f32.mrf.mxu0  ;;  %v1057_v39 = vpop.f32.mrf.mxu1 }
 0x189   : > { %v644_v44 = vadd.f32 %v1053_v38, %v507_v32  ;;  %v660_v45 = vadd.f32 %v1057_v39, %v527_v28 }
 0x18a   : > { %v635_v48 = vpop.f32.mrf.mxu0  ;;  %v651_v49 = vpop.f32.mrf.mxu1 }
 0x18b   : > { %v1013_v50 = vpack.c.bf16 %v644_v44, %v641_v42  ;;  %v1023_v51 = vpack.c.bf16 %v660_v45, %v657_v43  ;;  %v636_v52 = vadd.f32 %v635_v48, %v497_v30  ;;  %v652_v53 = vadd.f32 %v651_v49, %v517_v26 }
 0x18c   : > { %v1060_v54 = vpop.f32.mrf.mxu1 }
 0x18d   : > { %1035 = vst [vmem:[%s1540_s14 + $0x8] sm:$0xff] %v1013_v50   ;;  %1036 = vst [vmem:[%s1545_s22 + $0x8] sm:$0xff] %v1023_v51   ;;  %v1008_v55 = vpack.c.bf16 %v636_v52, %v633_v46  ;;  %v1018_v56 = vpack.c.bf16 %v652_v53, %v649_v47 }
 0x18e   : > { %v1570_v57 = vpop.f32.mrf.mxu1 }
 0x18f   : > { %1009 = vst [vmem:[%s1540_s14] sm:$0xff] %v1008_v55   ;;  %1019 = vst [vmem:[%s1545_s22] sm:$0xff] %v1018_v56  }
 0x190   : > { %v1061_v60 = vpop.f32.mrf.mxu1 }
 0x191   : > { %1174 = shalt.err (!%p1171_p7)
}
 0x192   : > { %s1175_s14 = scalar_lea.hbm %s1568_s9, 256  ;;  %s1179_s13 = scalar_lea.hbm %s1703_s6, 1024 }
 0x193   : > { %p1176_p10 = scmp.ne.s32.totalorder %s1568_s9, %s1175_s14  ;;  %p1180_p13 = scmp.lt.s32.totalorder %s1568_s9, %s1703_s6 }
 0x194   : > { %p1181_p0 = scmp.lt.s32.totalorder %s1179_s13, %s1175_s14 }
 0x195   : > { %p1177_p11 = pnand %p1176_p10, %p1422_p8 }
 0x196   : > { %p1182_p1 = por %p1181_p0, %p1180_p13 }
 0x197   : > { %p1178_p12 = pneg %p1177_p11 }
 0x199   : > { %p1183_p2 = pnand %p1182_p1, %p1178_p12 }
 0x19b   : > { %1186 = shalt.err (!%p1183_p2)
}
 0x19c   : > { %s1708_s2 = smov 64   ;;  %s1314_s3 = smov 128   ;;  %v673_v61 = vadd.f32 %v1060_v54, %v542_v59  ;;  %v676_v62 = vadd.f32 %v1061_v60, %v547_v58 }
 0x19d   : > { %s1315_s18 = smov 4   ;;  %s1723_s1 = scalar_lea.sflag [#allocation6], %s1550_s17 }
 0x19e   : > { %1067 = dma.vmem_to_hbm [thread:$0]  (%p1422_p8), %s1560_s23, 256, %s1568_s9, %s1723_s1, %s1708_s2, %s1314_s3, %s1315_s18  }
 0x19f   : > { %s740_s14 = scalar_lea.sflag [#allocation4], %s1516_s10  ;;  %s1187_s22 = scalar_lea.vmem %s1556_s19, 256 }
 0x1a0   : > { %p1188_p3 = scmp.ne.s32.totalorder %s1556_s19, %s1187_s22  ;;  %s1316_s21 = smov [#allocation3]  }
 0x1a1   : > { %s1191_s13 = sshll.u32 %s1316_s21, 4  ;;  %s1192_s13 = int_to_ptr.vmem [resolvable:$false] %s1191_s13 }
 0x1a2   : > { %p1189_p4 = pnand %p1188_p3, %p1422_p8  ;;  %s1193_s28 = scalar_lea.vmem %s1192_s13, 512 }
 0x1a3   : > { %p1194_p6 = scmp.lt.s32.totalorder %s1556_s19, %s1192_s13  ;;  %p1195_p7 = scmp.lt.s32.totalorder %s1193_s28, %s1187_s22 }
 0x1a4   : > { %p1190_p5 = pneg %p1189_p4 }
 0x1a5   : > { %p1196_p10 = por %p1195_p7, %p1194_p6 }
 0x1a7   : > { %p1197_p11 = pnand %p1196_p10, %p1190_p5 }
 0x1a9   : > { %1200 = shalt.err (!%p1197_p11)
}
 0x1aa   : > { %s1201_s23 = scalar_lea.hbm %s1576_s0, 256  ;;  %s1205_s1 = scalar_lea.hbm %s1702_s5, 1024 }
 0x1ab   : > { %p1202_p12 = scmp.ne.s32.totalorder %s1576_s0, %s1201_s23  ;;  %p1206_p1 = scmp.lt.s32.totalorder %s1576_s0, %s1702_s5 }
 0x1ac   : > { %p1207_p2 = scmp.lt.s32.totalorder %s1205_s1, %s1201_s23 }
 0x1ad   : > { %p1203_p13 = pnand %p1202_p12, %p1422_p8 }
 0x1ae   : > { %p1208_p3 = por %p1207_p2, %p1206_p1 }
 0x1af   : > { %p1204_p0 = pneg %p1203_p13 }
 0x1b1   : > { %p1209_p4 = pnand %p1208_p3, %p1204_p0 }
 0x1b3   : > { %1212 = shalt.err (!%p1209_p4)
}
 0x1b4   : > { %s1724_s22 = smov 64   ;;  %s363_s13 = scalar_lea.vmem [#allocation7], %s1536_s12  ;;  %v667_v63 = vpop.f32.mrf.mxu1  ;;  %v665_v0 = vadd.f32 %v1570_v57, %v1554_v41  ;;  %v1033_v1 = vpack.c.bf16 %v676_v62, %v673_v61 }
 0x1b5   : > { %1066 = dma.vmem_to_hbm [thread:$0]  (%p1422_p8), %s1556_s19, 256, %s1576_s0, %s740_s14, %s1724_s22, %s1314_s3, %s1315_s18   ;;  %v668_v2 = vadd.f32 %v667_v63, %v1552_v40 }
 0x1b6   : > { %s798_s28 = sshll.u32 %s363_s13, 4  ;;  %1037 = vst [vmem:[%s363_s13 + $0x8] sm:$0xff] %v1033_v1   ;;  %s1640_s0 = scalar_lea.hbm %s1704_s7, %s1558_s27  ;;  %s1634_s28 = int_to_ptr.vmem [resolvable:$true] %s798_s28 }
 0x1b7   : > { %v1028_v3 = vpack.c.bf16 %v668_v2, %v665_v0  ;;  %s1213_s12 = scalar_lea.vmem %s1634_s28, 256  ;;  %s1317_s19 = smov [#allocation7]  }
 0x1b8   : > { %p1214_p5 = scmp.ne.s32.totalorder %s1634_s28, %s1213_s12  ;;  %s1217_s14 = sshll.u32 %s1317_s19, 4  ;;  %s1218_s14 = int_to_ptr.vmem [resolvable:$false] %s1217_s14 }
 0x1b9   : > { %1029 = vst [vmem:[%s363_s13] sm:$0xff] %v1028_v3   ;;  %s1219_s10 = scalar_lea.vmem %s1218_s14, 512  ;;  %p1220_p10 = scmp.lt.s32.totalorder %s1634_s28, %s1218_s14 }
 0x1ba   : > { %p1215_p6 = pnand %p1214_p5, %p1422_p8  ;;  %p1221_p11 = scmp.lt.s32.totalorder %s1219_s10, %s1213_s12 }
 0x1bc   : > { %p1216_p7 = pneg %p1215_p6  ;;  %p1222_p12 = por %p1221_p11, %p1220_p10 }
 0x1be   : > { %p1223_p13 = pnand %p1222_p12, %p1216_p7 }
 0x1c0   : > { %1226 = shalt.err (!%p1223_p13)
}
 0x1c1   : > { %s1227_s27 = scalar_lea.hbm %s1640_s0, 256  ;;  %s1231_s21 = scalar_lea.hbm %s1704_s7, 1024 }
 0x1c2   : > { %p1228_p0 = scmp.ne.s32.totalorder %s1640_s0, %s1227_s27  ;;  %p1232_p3 = scmp.lt.s32.totalorder %s1640_s0, %s1704_s7 }
 0x1c3   : > { %p1233_p4 = scmp.lt.s32.totalorder %s1231_s21, %s1227_s27 }
 0x1c4   : > { %p1229_p1 = pnand %p1228_p0, %p1422_p8 }
 0x1c5   : > { %p1234_p5 = por %p1233_p4, %p1232_p3 }
 0x1c6   : > { %p1230_p2 = pneg %p1229_p1 }
 0x1c8   : > { %p1235_p6 = pnand %p1234_p5, %p1230_p2 }
 0x1ca   : > { %1238 = shalt.err (!%p1235_p6)
}
 0x1cb   : > { %s1725_s23 = scalar_lea.sflag [#allocation6], %s1550_s17 }
 0x1cc   : > { %1068 = dma.vmem_to_hbm [thread:$0]  (%p1422_p8), %s1634_s28, 256, %s1640_s0, %s1725_s23, %s1724_s22, %s1314_s3, %s1315_s18  }
 0x1cd PF: > { %p1082_p7 = scmp.ge.s32.totalorder %s1309_s8, 2  ;;  %s813_s12 = sand.u32 1, %s1281_s24  }
 0x1ce   : > { %s814_s19 = scalar_lea.sflag [#allocation4], %s813_s12 }
 0x1cf   : > { %p1073_p10 = pnand %p1082_p7, %p1426_p9 }
 0x1d1   : > { %p1074_p11 = pneg %p1073_p10 }
 0x1d3   : > { %1272 = dma.done.wait (%p1074_p11), %s814_s19, 256  }
 0x1d4   : > { %1274 = vsyncadd (%p1074_p11), %s814_s19, 4294967040  ;;  %s1726_s15 = sadd.s32 4294967294, %s1309_s8  }
 0x1d5   : > { %s822_s14 = sand.u32 1, %s1726_s15  }
 0x1d6   : > { %s823_s10 = scalar_lea.sflag [#allocation6], %s822_s14 }
 0x1d7   : > { %1276 = dma.done.wait (%p1074_p11), %s823_s10, 512  }
 0x1d8   : > { %1278 = vsyncadd (%p1074_p11), %s823_s10, 4294966784  ;;  %s24_s8 = sadd.s32 1, %s1309_s8   ;;  %s1727_s16 = sld [smem:[#allocation10_spill]] }
 0x1d9   : > { %p21_p8 = scmp.ge.s32.totalorder %s24_s8, 6   ;;  %s1728_s24 = smov %s1285_s25 }
 0x1da   : > { %s1729_s25 = smov %s1289_s26  ;;  %s1730_s26 = smov %s1434_s20 }
 0x1db   : > { %s1731_s27 = smov %s1301_s29  ;;  %s1732_s28 = smov %s1305_s30 }
 0x1dc   : > { %s1733_s29 = smov %s1736_s11  ;;  %23 = sbr.rel (!%p21_p8) target bundleno = 12 (0xc), region = 150 }
 0x1de   : > { %s1734_s30 = smov %s1727_s16 }
 0x1e1   :  { %837 = vsyncpa [#allocation4], 1 }
 0x1e2   :  { %839 = vsyncpa [#allocation4 + $0x1], 1 }
 0x1e3   :  { %840 = vsyncpa [#allocation6], 1 }
 0x1e4   :  { %842 = vsyncpa [#allocation6 + $0x1], 1 }

</bundles_post_ra>
